<compile_context>
chip_gen: v7x
topology: tpu7x:2x2x1
jax: 0.10.0
libtpu: 0.0.40
codegen_flags: <defaults>
</compile_context>

<pallas_src>
import jax
import jax.numpy as jnp
from jax.experimental import pallas as pl
from jax.experimental.pallas import tpu as pltpu


def _pixel_shuffle_kernel(x_ref, o_ref):
    # x_ref: (1, tc, 2, W)  channel-pair view of the input block
    # o_ref: (1, tc, 2*W)   lane-dense output block
    w = x_ref.shape[-1]
    pair = x_ref[...]
    o_ref[:, :, :w] = pair[:, :, 0, :]   # even channel of each pair
    o_ref[:, :, w:] = pair[:, :, 1, :]   # odd channel of each pair


def pixel_shuffle_forward(x, upscale_factor=2):
    """x: (N, C, W) -> (N, C // 2, 2 * W), matching input.view(n, c//2, 2*w).

    `upscale_factor` is accepted for API parity with the PyTorch module but,
    exactly like the reference forward(), it is unused (the reference
    hard-codes the x2 channel-pair -> width merge).
    """
    n, c, w = x.shape
    assert c % 2 == 0, "channel dim must be even"
    c_out = c // 2
    w2 = 2 * w

    # Free metadata reshape: split the channel axis into (pair index, 2).
    x4 = x.reshape(n, c_out, 2, w)

    # Channel tile: whole axis if it fits comfortably, otherwise a multiple of
    # 8 output rows (sublane alignment), capped at ~2 MiB per block so the
    # double-buffered in+out blocks stay well under the scoped VMEM limit.
    bytes_per_out_row = w2 * x.dtype.itemsize
    max_rows = max(1, (2 * 1024 * 1024) // bytes_per_out_row)
    if c_out <= max_rows:
        tc = c_out
    else:
        tc = max(8, (max_rows // 8) * 8)
    grid = (n, pl.cdiv(c_out, tc))

    return pl.pallas_call(
        _pixel_shuffle_kernel,
        out_shape=jax.ShapeDtypeStruct((n, c_out, w2), x.dtype),
        grid_spec=pltpu.PrefetchScalarGridSpec(
            num_scalar_prefetch=0,
            grid=grid,
            in_specs=[pl.BlockSpec((1, tc, 2, w), lambda i, j: (i, j, 0, 0))],
            out_specs=pl.BlockSpec((1, tc, w2), lambda i, j: (i, j, 0)),
        ),
        compiler_params=pltpu.CompilerParams(
            dimension_semantics=("parallel", "parallel")),
    )(x4)


if __name__ == "__main__":
    key = jax.random.PRNGKey(0)
    x = jax.random.normal(key, (2, 4, 16), jnp.float32)   # (N, C, W)

    fwd = jax.jit(pixel_shuffle_forward)
    out = fwd(x)
    jax.block_until_ready(out)

    assert out.shape == (2, 2, 32), out.shape
    ref = x.reshape(2, 2, 32)            # reference view semantics
    assert jnp.array_equal(out, ref), "mismatch vs. reference view"
    print("KERNEL_OK")
</pallas_src>

<mosaic_0001>
module attributes {stable_mosaic.version = 11 : i64} {
  func.func @_pixel_shuffle_kernel(%arg0: i32, %arg1: i32, %arg2: memref<1x2x2x16xf32, #tpu.memory_space<vmem>>, %arg3: memref<1x2x32xf32, #tpu.memory_space<vmem>>) attributes {dimension_semantics = [#tpu.dimension_semantics<parallel>, #tpu.dimension_semantics<parallel>], iteration_bounds = array<i64: 2, 1>, scalar_prefetch = 0 : i64, scratch_operands = 0 : i64, tpu.core_type = #tpu.core_type<tc>, window_params = [{transform_indices = @transform_0, window_bounds = array<i64: 1, 2, 2, 16>}, {transform_indices = @transform_1, window_bounds = array<i64: 1, 2, 32>}]} {
    %c0 = arith.constant 0 : index
    %c0_0 = arith.constant 0 : index
    %c0_1 = arith.constant 0 : index
    %c0_2 = arith.constant 0 : index
    %0 = vector.load %arg2[%c0, %c0_0, %c0_1, %c0_2] : memref<1x2x2x16xf32, #tpu.memory_space<vmem>>, vector<1x2x2x16xf32>
    %1 = vector.extract_strided_slice %0 {offsets = [0, 0, 0, 0], sizes = [1, 2, 1, 16], strides = [1, 1, 1, 1]} : vector<1x2x2x16xf32> to vector<1x2x1x16xf32>
    %2 = vector.shape_cast %1 : vector<1x2x1x16xf32> to vector<1x2x16xf32>
    %c0_3 = arith.constant 0 : index
    %c0_4 = arith.constant 0 : index
    %c0_5 = arith.constant 0 : index
    %3 = vector.load %arg3[%c0_3, %c0_4, %c0_5] : memref<1x2x32xf32, #tpu.memory_space<vmem>>, vector<1x2x16xf32>
    tpu.vector_store %arg3[%c0_3, %c0_4, %c0_5], %2 {strides = array<i32>} : memref<1x2x32xf32, #tpu.memory_space<vmem>>, vector<1x2x16xf32>,
    %4 = vector.extract_strided_slice %0 {offsets = [0, 0, 1, 0], sizes = [1, 2, 1, 16], strides = [1, 1, 1, 1]} : vector<1x2x2x16xf32> to vector<1x2x1x16xf32>
    %5 = vector.shape_cast %4 : vector<1x2x1x16xf32> to vector<1x2x16xf32>
    %c0_6 = arith.constant 0 : index
    %c0_7 = arith.constant 0 : index
    %c16 = arith.constant 16 : index
    %6 = vector.load %arg3[%c0_6, %c0_7, %c16] : memref<1x2x32xf32, #tpu.memory_space<vmem>>, vector<1x2x16xf32>
    tpu.vector_store %arg3[%c0_6, %c0_7, %c16], %5 {strides = array<i32>} : memref<1x2x32xf32, #tpu.memory_space<vmem>>, vector<1x2x16xf32>,
    return
  }
  func.func @transform_0(%arg0: i32, %arg1: i32) -> (i32, i32, i32, i32) {
    %c0_i32 = arith.constant 0 : i32
    %c0_i32_0 = arith.constant 0 : i32
    %c0_i32_1 = arith.constant 0 : i32
    return %arg0, %arg1, %c0_i32, %c0_i32_0 : i32, i32, i32, i32
  }
  func.func @transform_1(%arg0: i32, %arg1: i32) -> (i32, i32, i32) {
    %c0_i32 = arith.constant 0 : i32
    %c0_i32_0 = arith.constant 0 : i32
    return %arg0, %arg1, %c0_i32 : i32, i32, i32
  }
}

</mosaic_0001>

<bundles_post_ra>
// kernel: pixel_shuffle_forward.1
= control target key start
LH: loop header
LB: loop body
LE: loop exit
PB: predicated region body
PF: predicated region fallthrough
CT: control target
= control target key end

     0   :  { %6 = vsyncpa [#allocation3], 0  ;;  %s651_s0 = inlined_call_operand.hbm [shape: f32[2,2,2,16], index: 0, kind: input, shape index: {}]   ;;  %s652_s1 = inlined_call_operand.hbm [shape: f32[2,2,32], index: 1, kind: output, shape index: {}]  }
   0x1   :  { %8 = vsyncpa [#allocation3 + $0x1], 0 }
   0x2   :  { %9 = vsyncpa [#allocation4], 0 }
   0x3   :  { %11 = vsyncpa [#allocation4 + $0x1], 0  ;;  %s477_s6 = smov 0   ;;  %s479_s7 = smov 0  }
   0x4   :  { %s481_s8 = smov 0   ;;  %s483_s9 = smov 0  }
   0x5   :  { %s485_s10 = smov 0   ;;  %s487_s11 = smov 0  }
   0x6 LB: > { %s268_s12 = sadd.s32 4294967295, %s460_s11   ;;  %s269_s13 = sadd.s32 4294967294, %s460_s11   ;;  %s460_s11 = sphi %s487_s11, %s17_s11   ;;  %s456_s10 = sphi %s485_s10, %s667_s10   ;;  %s452_s9 = sphi %s483_s9, %s666_s9   ;;  %s448_s8 = sphi %s481_s8, %s665_s8   ;;  %s444_s7 = sphi %s479_s7, %s664_s7   ;;  %s440_s6 = sphi %s477_s6, %s663_s6  }
   0x7   : > { %s29_s14 = sadd.s32 1, %s456_s10  ;;  %s38_s15 = sadd.s32 1, %s448_s8 }
   0x8   : > { %p31_p0 = scmp.ge.s32.totalorder %s29_s14, 2  ;;  %p45_p1 = scmp.ne.s32.totalorder %s448_s8, %s444_s7 }
   0x9   : > { %p46_p2 = scmp.eq.s32.totalorder %s460_s11, 0  ;;  %p51_p3 = scmp.ne.s32.totalorder %s444_s7, %s440_s6 }
   0xa   : > { %s669_s14 = smov (%p31_p0, %s29_s14), 0  ;;  %p52_p5 = scmp.eq.s32.totalorder %s268_s12, 0 }
   0xb   : > { %p518_p4 = por %p46_p2, %p45_p1  ;;  %s33_s17 = ssub.s32 %s456_s10, %s669_s14 }
   0xc   : > { %p77_p6 = scmp.eq.s32.totalorder %s268_s12, 1  ;;  %p36_p7 = scmp.eq.s32.totalorder %s33_s17, 0 }
   0xd   : > { %p524_p8 = por %p52_p5, %p51_p3  ;;  %p83_p10 = scmp.eq.s32.totalorder %s269_s13, 1 }
   0xe   : > { %p528_p9 = por %p77_p6, %p45_p1  ;;  %p295_p13 = scmp.lt.s32.totalorder %s460_s11, 2 }
   0xf   : > { %s533_s20 = scalar_select %p36_p7, %s448_s8, %s38_s15  }
  0x10   : > { %s656_s19 = scalar_select %p528_p9, 1, 0 }
  0x11   : > { %p535_p11 = por %p83_p10, %p51_p3  ;;  %s103_s22 = sand.u32 1, %s448_s8  }
  0x12   : > { %s272_s23 = sshll.u32 %s103_s22, 2  ;;  %s282_s24 = sshll.u32 %s456_s10, 6 }
  0x13   : > { %s657_s21 = scalar_select %p535_p11, 1, 0 }
  0x14   : > { %s546_s27 = scalar_lea.hbm %s651_s0, %s282_s24  ;;  %s107_s28 = scalar_lea.vmem [#allocation2], %s272_s23 }
  0x15   : > { %s116_s29 = sshll.u32 %s107_s28, 4  ;;  %p552_p0 = pnand %p295_p13, %p518_p4  ;;  %s548_s29 = int_to_ptr.vmem [resolvable:$true] %s116_s29 }
  0x16   : > { %s557_s2 = scalar_lea.sflag [#allocation3], %s103_s22  ;;  %s348_s3 = scalar_lea.hbm %s546_s27, 64 }
  0x17   : > { %p349_p2 = scmp.ne.s32.totalorder %s546_s27, %s348_s3  ;;  %p350_p3 = pneg %p552_p0 }
  0x18   : > { %s353_s12 = scalar_lea.hbm %s651_s0, 128  ;;  %p354_p4 = scmp.lt.u32.totalorder %s546_s27, %s651_s0 }
  0x19   : > { %p351_p5 = pnand %p350_p3, %p349_p2  ;;  %p355_p7 = scmp.lt.u32.totalorder %s353_s12, %s348_s3 }
  0x1a   : > { %p357_p13 = scmp.lt.u32.totalorder %s348_s3, %s546_s27 }
  0x1b   : > { %p352_p6 = pneg %p351_p5  ;;  %p356_p10 = por %p355_p7, %p354_p4 }
  0x1d   : > { %p358_p12 = por %p357_p13, %p356_p10 }
  0x1f   : > { %p359_p1 = pnand %p358_p12, %p352_p6 }
  0x21   : > { %362 = shalt.err (!%p359_p1)
}
  0x22   : > { %s363_s16 = scalar_lea.vmem %s548_s29, 64  ;;  %s462_s17 = smov [#allocation2]  }
  0x23   : > { %p364_p2 = scmp.ne.s32.totalorder %s548_s29, %s363_s16  ;;  %s368_s22 = sshll.u32 %s462_s17, 4  ;;  %s369_s22 = int_to_ptr.vmem [resolvable:$false] %s368_s22 }
  0x24   : > { %s370_s23 = scalar_lea.vmem %s369_s22, 128  ;;  %p371_p9 = scmp.lt.s32.totalorder %s548_s29, %s369_s22 }
  0x25   : > { %p366_p5 = pnand %p364_p2, %p350_p3  ;;  %p372_p4 = scmp.lt.s32.totalorder %s370_s23, %s363_s16 }
  0x27   : > { %p367_p11 = pneg %p366_p5  ;;  %p373_p7 = por %p372_p4, %p371_p9 }
  0x29   : > { %p374_p10 = pnand %p373_p7, %p367_p11 }
  0x2b   : > { %377 = shalt.err (!%p374_p10)
}
  0x2c   : > { %s463_s24 = smov 32   ;;  %s464_s25 = smov 2  }
  0x2d   : > { %290 = dma.hbm_to_vmem [thread:$0]  (!%p552_p0), %s546_s27, 64, %s548_s29, %s557_s2, %s463_s24, %s463_s24, %s464_s25  }
  0x2e   : > { %p124_p12 = scmp.lt.s32.totalorder %s460_s11, 3  ;;  %p659_p1 = scmp.ge.s32.totalorder %s460_s11, 1 }
  0x30   : > { %p125_p3 = pnand %p659_p1, %p124_p12 }
  0x31   : > { %s589_s26 = sand.u32 (!%p125_p3), 1, %s444_s7  }
  0x32   : > { %128 = sbr.rel (%p125_p3) target bundleno = 191 (0xbf), region = 24  ;;  %s276_s28 = sshll.u32 (!%p125_p3), %s589_s26, 2 }
  0x33   : > { %s131_s3 = scalar_lea.sflag (!%p125_p3), [#allocation3], %s589_s26  ;;  %s134_s4 = scalar_lea.vmem (!%p125_p3), [#allocation2], %s276_s28 }
  0x39   : > { %431 = dma.done.wait (%p524_p8), %s131_s3, 64  }
  0x3a   : > { %433 = vsyncadd (%p524_p8), %s131_s3, 4294967232  ;;  %s277_s27 = sshll.u32 %s589_s26, 1  ;;  %v154_v0 = vld [vmem:[%s134_s4] sm:$0x3]  ;;  %v155_v1 = vld [vmem:[%s134_s4 + $0x2] sm:$0x3] }
  0x3b   : > { %vm159_vm0 = vcmask 1041409   ;;  %vm164_vm1 = vcmask 1042434   ;;  %v158_v2 = vrot.slane %v155_v1, 7  ;;  %vm162_vm2 = vcmask 123904   ;;  %s152_s29 = scalar_lea.vmem [#allocation5], %s277_s27  ;;  %s465_s30 = smov 16  }
  0x3c   : > { %s279_s2 = sshll.u32 %s452_s9, 5  ;;  %s186_s18 = sshll.u32 %s152_s29, 4  ;;  %vm169_vm3 = vcmask 256129   ;;  %s604_s18 = int_to_ptr.vmem [resolvable:$true] %s186_s18 }
  0x3d   : > { %v160_v3 = vsel %vm159_vm0, %v158_v2, %v154_v0  ;;  %v165_v4 = vsel %vm164_vm1, %v158_v2, %v154_v0  ;;  %s602_s13 = scalar_lea.hbm %s652_s1, %s279_s2  ;;  %s172_s15 = scalar_lea.sflag [#allocation4], %s589_s26 }
  0x3e   : > { %163 = vst.msk [vmem:[%s152_s29] sm:$0x3] %vm162_vm2, %v160_v3  ;;  %166 = vrot.lane.b32.xlu0 %v165_v4, %s465_s30  ;;  %s378_s16 = scalar_lea.vmem %s604_s18, 32  ;;  %p660_p9 = scmp.ne.s32.totalorder %s656_s19, 0 }
  0x3f   : > { %p379_p8 = scmp.ne.s32.totalorder %s604_s18, %s378_s16  ;;  %s466_s9 = smov [#allocation5]  }
  0x40   : > { %s382_s17 = sshll.u32 %s466_s9, 4  ;;  %s383_s17 = int_to_ptr.vmem [resolvable:$false] %s382_s17 }
  0x41   : > { %p380_p11 = pnand %p379_p8, %p660_p9  ;;  %s384_s22 = scalar_lea.vmem %s383_s17, 64 }
  0x42   : > { %p385_p6 = scmp.lt.s32.totalorder %s604_s18, %s383_s17  ;;  %p386_p13 = scmp.lt.s32.totalorder %s384_s22, %s378_s16 }
  0x43   : > { %p381_p0 = pneg %p380_p11 }
  0x44   : > { %p387_p2 = por %p386_p13, %p385_p6 }
  0x46   : > { %p388_p5 = pnand %p387_p2, %p381_p0 }
  0xb0   : > { %v167_v5 = vpop.permute.xlu0 %166 }
  0xb1   : > { %170 = vst.msk [vmem:[%s152_s29 - $0x1] sm:$0x6] %vm169_vm3, %v167_v5 }
  0xb2   : > { %391 = shalt.err (!%p388_p5)
}
  0xb3   : > { %s392_s23 = scalar_lea.hbm %s602_s13, 32  ;;  %s396_s26 = scalar_lea.hbm %s652_s1, 64 }
  0xb4   : > { %p393_p4 = scmp.ne.s32.totalorder %s602_s13, %s392_s23  ;;  %p397_p12 = scmp.lt.u32.totalorder %s602_s13, %s652_s1 }
  0xb5   : > { %p398_p1 = scmp.lt.u32.totalorder %s396_s26, %s392_s23  ;;  %p400_p8 = scmp.lt.u32.totalorder %s392_s23, %s602_s13 }
  0xb6   : > { %p394_p7 = pnand %p393_p4, %p660_p9 }
  0xb7   : > { %p399_p3 = por %p398_p1, %p397_p12 }
  0xb8   : > { %p395_p10 = pneg %p394_p7 }
  0xb9   : > { %p401_p11 = por %p400_p8, %p399_p3 }
  0xbb   : > { %p402_p0 = pnand %p401_p11, %p395_p10 }
  0xbd   : > { %405 = shalt.err (!%p402_p0)
}
  0xbe   : > { %285 = dma.vmem_to_hbm [thread:$0]  (%p660_p9), %s604_s18, 32, %s602_s13, %s172_s15  }
  0xbf PF: > { %s198_s4 = sand.u32 1, %s440_s6   ;;  %p661_p6 = scmp.ne.s32.totalorder %s657_s21, 0 }
  0xc0   : > { %p662_p13 = scmp.ge.s32.totalorder %s460_s11, 2  ;;  %s199_s27 = scalar_lea.sflag [#allocation4], %s198_s4 }
  0xc2   : > { %p292_p2 = pnand %p662_p13, %p661_p6 }
  0xc4   : > { %435 = dma.done.wait (!%p292_p2), %s199_s27, 32  }
  0xc5   : > { %437 = vsyncadd (!%p292_p2), %s199_s27, 4294967264  ;;  %s17_s11 = sadd.s32 1, %s460_s11   ;;  %s663_s6 = smov %s444_s7 }
  0xc6   : > { %p14_p5 = scmp.ge.s32.totalorder %s17_s11, 4   ;;  %s664_s7 = smov %s448_s8 }
  0xc7   : > { %s665_s8 = smov %s533_s20  ;;  %s666_s9 = smov %s456_s10 }
  0xc8   : > { %s667_s10 = smov %s669_s14  ;;  %16 = sbr.rel (!%p14_p5) target bundleno = 6 (0x6), region = 69 }
  0xcf   :  { %204 = vsyncpa [#allocation3], 1 }
  0xd0   :  { %206 = vsyncpa [#allocation3 + $0x1], 1 }
  0xd1   :  { %207 = vsyncpa [#allocation4], 1 }
  0xd2   :  { %209 = vsyncpa [#allocation4 + $0x1], 1 }

</bundles_post_ra>
